<compile_context>
chip_gen: v6e
topology: v6e:2x2x1
jax: 0.10.0
libtpu: 0.0.40
codegen_flags: <defaults>
</compile_context>

<pallas_src>
import functools

import jax
import jax.numpy as jnp
from jax import lax
from jax.experimental import pallas as pl
from jax.experimental.pallas import tpu as pltpu


def _round_up(x, m):
    return ((x + m - 1) // m) * m


def _default_float_tiles(vocab_size, embedding_dim):
    """Per-generation tile defaults for the x @ W path (clamped to problem)."""
    try:
        kind = jax.devices()[0].device_kind.lower()
    except Exception:  # pragma: no cover - defensive
        kind = ""
    if "v7" in kind:
        tk0, tn0 = 2048, 512          # ~2 MB bf16 W tile / step (3.2 TB/s HBM)
    elif "v5e" in kind or "lite" in kind:
        tk0, tn0 = 512, 512           # ~0.5 MB / step is enough at 0.8 TB/s
    else:                              # v6e and default
        tk0, tn0 = 1024, 512          # ~1 MB bf16 W tile / step
    tm = 256
    tn = min(tn0, _round_up(embedding_dim, 128))
    tk = min(tk0, _round_up(vocab_size, 128))
    return tm, tn, tk


# ----------------------------------------------------------------------------
# Kernel 1: float path  --  out = x @ W   (the Gumbel-Softmax / relaxed path)
# ----------------------------------------------------------------------------
def _relaxed_matmul_kernel(x_ref, w_ref, o_ref, acc_ref):
    # x_ref: (tm, tk), w_ref: (tk, tn), o_ref: (tm, tn), acc_ref: (tm, tn) f32
    @pl.when(pl.program_id(2) == 0)
    def _():
        acc_ref[...] = jnp.zeros_like(acc_ref)

    acc_ref[...] += jnp.dot(
        x_ref[...], w_ref[...], preferred_element_type=jnp.float32
    )

    @pl.when(pl.program_id(2) == pl.num_programs(2) - 1)
    def _():
        o_ref[...] = acc_ref[...].astype(o_ref.dtype)


def relaxed_matmul(
    x2d,
    w_prepped,        # already cast to compute_dtype and padded to (Vp, Dp)
    *,
    V,
    D,
    tm,
    tn,
    tk,
    compute_dtype=jnp.bfloat16,
    out_dtype=jnp.float32,
):
    """out = x2d @ W, tiled over (M, D, V) with a VMEM f32 accumulator."""
    M = x2d.shape[0]
    assert x2d.shape[1] == V
    Vp, Dp = w_prepped.shape
    assert Vp % tk == 0 and Dp % tn == 0

    # bf16 packs 16 rows per sublane group -> round M tile to 16.
    tm = min(tm, _round_up(M, 16))
    Mp = _round_up(M, tm)

    # v7x megacore: keep at least one 'parallel' axis with extent >= 2 when it
    # costs nothing (Dp unchanged, so no extra padding is introduced).
    if (Mp // tm) == 1 and (Dp // tn) == 1 and tn % 256 == 0:
        tn //= 2

    xc = x2d.astype(compute_dtype)
    if Mp != M or Vp != V:
        xc = jnp.pad(xc, ((0, Mp - M), (0, Vp - V)))

    csize = jnp.dtype(compute_dtype).itemsize
    cost = pl.CostEstimate(
        flops=2 * Mp * Vp * Dp,
        transcendentals=0,
        bytes_accessed=(Mp * Vp * csize) * (Dp // tn)
        + (Vp * Dp * csize) * (Mp // tm)
        + Mp * Dp * jnp.dtype(out_dtype).itemsize,
    )

    out = pl.pallas_call(
        _relaxed_matmul_kernel,
        out_shape=jax.ShapeDtypeStruct((Mp, Dp), out_dtype),
        grid_spec=pltpu.PrefetchScalarGridSpec(
            num_scalar_prefetch=0,
            grid=(Mp // tm, Dp // tn, Vp // tk),
            in_specs=[
                pl.BlockSpec((tm, tk), lambda i, j, k: (i, k)),
                pl.BlockSpec((tk, tn), lambda i, j, k: (k, j)),
            ],
            out_specs=pl.BlockSpec((tm, tn), lambda i, j, k: (i, j)),
            scratch_shapes=[pltpu.VMEM((tm, tn), jnp.float32)],
        ),
        compiler_params=pltpu.CompilerParams(
            dimension_semantics=("parallel", "parallel", "arbitrary")
        ),
        cost_estimate=cost,
    )(xc, w_prepped)

    if Mp != M or Dp != D:
        out = out[:M, :D]
    return out


# ----------------------------------------------------------------------------
# Kernel 2a: integer path, small table -- W resident in VMEM, T tokens / step.
# ----------------------------------------------------------------------------
def _embed_vmem_kernel(idx_ref, w_ref, o_ref, *, tokens_per_step):
    # idx_ref: SMEM (Np,) int32 (scalar prefetch), w_ref: (V, D) resident block,
    # o_ref: (T, D) output block for this grid step.
    base = pl.program_id(0) * tokens_per_step

    def body(t, carry):
        row = idx_ref[base + t]
        o_ref[pl.ds(t, 1), :] = w_ref[pl.ds(row, 1), :]
        return carry

    lax.fori_loop(0, tokens_per_step, body, 0)


def embed_gather_vmem(idx_flat, w, *, tokens_per_step=256):
    N = idx_flat.shape[0]
    V, D = w.shape
    T = min(tokens_per_step, _round_up(N, 8))
    Np = _round_up(N, T)

    idx = jnp.clip(idx_flat.astype(jnp.int32), 0, V - 1)
    if Np != N:
        idx = jnp.pad(idx, (0, Np - N))

    kernel = functools.partial(_embed_vmem_kernel, tokens_per_step=T)
    cost = pl.CostEstimate(
        flops=0,
        transcendentals=0,
        bytes_accessed=V * D * w.dtype.itemsize + 2 * Np * D * w.dtype.itemsize,
    )
    out = pl.pallas_call(
        kernel,
        out_shape=jax.ShapeDtypeStruct((Np, D), w.dtype),
        grid_spec=pltpu.PrefetchScalarGridSpec(
            num_scalar_prefetch=1,
            grid=(Np // T,),
            in_specs=[
                # Constant block index -> W is DMA'd into VMEM once and stays
                # resident for every grid step.
                pl.BlockSpec((V, D), lambda i, idx_ref: (0, 0)),
            ],
            out_specs=pl.BlockSpec((T, D), lambda i, idx_ref: (i, 0)),
        ),
        compiler_params=pltpu.CompilerParams(dimension_semantics=("parallel",)),
        cost_estimate=cost,
    )(idx, w)
    if Np != N:
        out = out[:N]
    return out


# ----------------------------------------------------------------------------
# Kernel 2b: integer path, large table -- per-row scalar-prefetch DMA gather.
# Deep buffering keeps several small row DMAs in flight.
# ----------------------------------------------------------------------------
def _embed_row_kernel(idx_ref, w_row_ref, o_row_ref):
    del idx_ref  # only used by the index_maps
    o_row_ref[...] = w_row_ref[...]


def embed_gather_hbm(idx_flat, w):
    N = idx_flat.shape[0]
    V, D = w.shape
    w3 = w.reshape(V, 1, D)  # metadata-only reshape
    idx = jnp.clip(idx_flat.astype(jnp.int32), 0, V - 1)

    cost = pl.CostEstimate(
        flops=0, transcendentals=0, bytes_accessed=2 * N * D * w.dtype.itemsize
    )
    out = pl.pallas_call(
        _embed_row_kernel,
        out_shape=jax.ShapeDtypeStruct((N, 1, D), w.dtype),
        grid_spec=pltpu.PrefetchScalarGridSpec(
            num_scalar_prefetch=1,
            grid=(N,),
            in_specs=[
                pl.BlockSpec(
                    (1, 1, D),
                    lambda i, idx_ref: (idx_ref[i], 0, 0),
                    pipeline_mode=pl.Buffered(8),
                ),
            ],
            out_specs=pl.BlockSpec((1, 1, D), lambda i, idx_ref: (i, 0, 0)),
        ),
        compiler_params=pltpu.CompilerParams(dimension_semantics=("parallel",)),
        cost_estimate=cost,
    )(idx, w3)
    return out.reshape(N, D)


# ----------------------------------------------------------------------------
# Module wrapper
# ----------------------------------------------------------------------------
class RelaxedEmbedding:
    """JAX/Pallas port of the PyTorch RelaxedEmbedding module (forward only)."""

    def __init__(
        self,
        vocab_size,
        embedding_dim,
        key,
        compute_dtype=jnp.bfloat16,
        out_dtype=jnp.float32,
        vmem_gather_bytes_limit=8 * 1024 * 1024,
    ):
        self.vocab_size = vocab_size
        self.embedding_dim = embedding_dim
        self.compute_dtype = compute_dtype
        self.out_dtype = out_dtype
        self.vmem_gather_bytes_limit = vmem_gather_bytes_limit

        # nn.Embedding default init: weight ~ N(0, 1); f32 master copy.
        self.weight = jax.random.normal(
            key, (vocab_size, embedding_dim), dtype=jnp.float32
        )

        # Float path: cache the bf16, tile-padded table ONCE (not per forward).
        # NOTE: bf16 MXU inputs with f32 accumulation slightly quantize the
        # Gumbel-Softmax probabilities vs PyTorch's f32 matmul; pass
        # compute_dtype=jnp.float32 for an exact-precision path.
        self._tm, self._tn, self._tk = _default_float_tiles(
            vocab_size, embedding_dim
        )
        Vp = _round_up(vocab_size, self._tk)
        Dp = _round_up(embedding_dim, self._tn)
        wc = self.weight.astype(compute_dtype)
        if (Vp, Dp) != (vocab_size, embedding_dim):
            wc = jnp.pad(wc, ((0, Vp - vocab_size), (0, Dp - embedding_dim)))
        self._w_compute = wc

    def __call__(self, x):
        if jnp.issubdtype(x.dtype, jnp.integer):
            # Integer path: embedding row lookup.
            lead = x.shape
            idx = x.reshape(-1)
            table_bytes = (
                self.vocab_size * self.embedding_dim * self.weight.dtype.itemsize
            )
            if table_bytes <= self.vmem_gather_bytes_limit:
                out = embed_gather_vmem(idx, self.weight)
            else:
                out = embed_gather_hbm(idx, self.weight)
            return out.reshape(*lead, self.embedding_dim)
        else:
            # Relaxed (float) path: matmul with the embedding table.
            *lead, V = x.shape
            assert V == self.vocab_size
            out = relaxed_matmul(
                x.reshape(-1, V),
                self._w_compute,
                V=self.vocab_size,
                D=self.embedding_dim,
                tm=self._tm,
                tn=self._tn,
                tk=self._tk,
                compute_dtype=self.compute_dtype,
                out_dtype=self.out_dtype,
            )
            return out.reshape(*lead, self.embedding_dim)


if __name__ == "__main__":
    key = jax.random.PRNGKey(0)
    k_w, k_x, k_idx = jax.random.split(key, 3)

    vocab_size = 128
    embedding_dim = 128
    batch, seq = 2, 8

    emb = RelaxedEmbedding(vocab_size, embedding_dim, k_w)

    # Float (Gumbel-Softmax-like) input: distributions over the vocab.
    logits = jax.random.normal(k_x, (batch, seq, vocab_size), dtype=jnp.float32)
    x_float = jax.nn.softmax(logits, axis=-1)

    # Integer input: token ids.
    x_long = jax.random.randint(k_idx, (batch, seq), 0, vocab_size, dtype=jnp.int32)

    y_float = jax.block_until_ready(emb(x_float))
    y_long = jax.block_until_ready(emb(x_long))

    # Reference checks (plain JAX).
    ref_float = jnp.matmul(x_float, emb.weight)
    ref_long = emb.weight[x_long]
    assert y_float.shape == (batch, seq, embedding_dim)
    assert y_long.shape == (batch, seq, embedding_dim)
    # Float path uses bf16 MXU inputs with f32 accumulation -> loose tolerance
    # against the pure-f32 reference.
    assert jnp.allclose(y_float, ref_float, atol=2e-2, rtol=2e-2)
    # Gather path copies rows exactly.
    assert jnp.array_equal(y_long, ref_long)

    print("KERNEL_OK")
</pallas_src>

<mosaic_0001>
module attributes {stable_mosaic.version = 11 : i64} {
  func.func @_relaxed_matmul_kernel(%arg0: i32, %arg1: i32, %arg2: i32, %arg3: memref<16x128xbf16, #tpu.memory_space<vmem>>, %arg4: memref<128x128xbf16, #tpu.memory_space<vmem>>, %arg5: memref<16x128xf32, #tpu.memory_space<vmem>>, %arg6: memref<16x128xf32, #tpu.memory_space<vmem>>) attributes {dimension_semantics = [#tpu.dimension_semantics<parallel>, #tpu.dimension_semantics<parallel>, #tpu.dimension_semantics<arbitrary>], iteration_bounds = array<i64: 1, 1, 1>, scalar_prefetch = 0 : i64, scratch_operands = 1 : i64, tpu.core_type = #tpu.core_type<tc>, window_params = [{transform_indices = @transform_0, window_bounds = array<i64: 16, 128>}, {transform_indices = @transform_1, window_bounds = array<i64: 128, 128>}, {transform_indices = @transform_2, window_bounds = array<i64: 16, 128>}]} {
    %c0_i32 = arith.constant 0 : i32
    %0 = arith.cmpi eq, %arg2, %c0_i32 : i32
    %1 = arith.extui %0 : i1 to i32
    %c0_i32_0 = arith.constant 0 : i32
    %2 = arith.cmpi ne, %1, %c0_i32_0 : i32
    scf.if %2 {
      %cst_10 = arith.constant 0.000000e+00 : f32
      %12 = vector.broadcast %cst_10 : f32 to vector<16x128xf32>
      %c0_11 = arith.constant 0 : index
      %c0_12 = arith.constant 0 : index
      %13 = vector.load %arg6[%c0_11, %c0_12] : memref<16x128xf32, #tpu.memory_space<vmem>>, vector<16x128xf32>
      tpu.vector_store %arg6[%c0_11, %c0_12], %12 {strides = array<i32>} : memref<16x128xf32, #tpu.memory_space<vmem>>, vector<16x128xf32>,
    } else {
    }
    %c0 = arith.constant 0 : index
    %c0_1 = arith.constant 0 : index
    %3 = vector.load %arg6[%c0, %c0_1] : memref<16x128xf32, #tpu.memory_space<vmem>>, vector<16x128xf32>
    %c0_2 = arith.constant 0 : index
    %c0_3 = arith.constant 0 : index
    %4 = vector.load %arg3[%c0_2, %c0_3] : memref<16x128xbf16, #tpu.memory_space<vmem>>, vector<16x128xbf16>
    %c0_4 = arith.constant 0 : index
    %c0_5 = arith.constant 0 : index
    %5 = vector.load %arg4[%c0_4, %c0_5] : memref<128x128xbf16, #tpu.memory_space<vmem>>, vector<128x128xbf16>
    %cst = arith.constant dense<0.000000e+00> : vector<16x128xf32>
    %6 = tpu.matmul %4, %5, %cst {dimension_numbers = #tpu.dot_dimension_numbers<[1], [0], [0], [1], [0, 0, 1, 1], [], []>} : vector<16x128xbf16>, vector<128x128xbf16>, vector<16x128xf32> -> vector<16x128xf32>
    %7 = arith.addf %3, %6 : vector<16x128xf32>
    %c0_6 = arith.constant 0 : index
    %c0_7 = arith.constant 0 : index
    %8 = vector.load %arg6[%c0_6, %c0_7] : memref<16x128xf32, #tpu.memory_space<vmem>>, vector<16x128xf32>
    tpu.vector_store %arg6[%c0_6, %c0_7], %7 {strides = array<i32>} : memref<16x128xf32, #tpu.memory_space<vmem>>, vector<16x128xf32>,
    %c0_i32_8 = arith.constant 0 : i32
    %9 = arith.cmpi eq, %arg2, %c0_i32_8 : i32
    %10 = arith.extui %9 : i1 to i32
    %c0_i32_9 = arith.constant 0 : i32
    %11 = arith.cmpi ne, %10, %c0_i32_9 : i32
    scf.if %11 {
      %c0_10 = arith.constant 0 : index
      %c0_11 = arith.constant 0 : index
      %12 = vector.load %arg6[%c0_10, %c0_11] : memref<16x128xf32, #tpu.memory_space<vmem>>, vector<16x128xf32>
      %c0_12 = arith.constant 0 : index
      %c0_13 = arith.constant 0 : index
      %13 = vector.load %arg5[%c0_12, %c0_13] : memref<16x128xf32, #tpu.memory_space<vmem>>, vector<16x128xf32>
      tpu.vector_store %arg5[%c0_12, %c0_13], %12 {strides = array<i32>} : memref<16x128xf32, #tpu.memory_space<vmem>>, vector<16x128xf32>,
    } else {
    }
    return
  }
  func.func @transform_0(%arg0: i32, %arg1: i32, %arg2: i32) -> (i32, i32) {
    %c0_i32 = arith.constant 0 : i32
    return %arg0, %arg2 : i32, i32
  }
  func.func @transform_1(%arg0: i32, %arg1: i32, %arg2: i32) -> (i32, i32) {
    %c0_i32 = arith.constant 0 : i32
    return %arg2, %arg1 : i32, i32
  }
  func.func @transform_2(%arg0: i32, %arg1: i32, %arg2: i32) -> (i32, i32) {
    %c0_i32 = arith.constant 0 : i32
    return %arg0, %arg1 : i32, i32
  }
}

</mosaic_0001>

<bundles_post_ra>
// kernel: tpu_custom_call.1
= control target key start
LH: loop header
LB: loop body
LE: loop exit
PB: predicated region body
PF: predicated region fallthrough
CT: control target
= control target key end

     0   :  { %7 = vsyncpa [#allocation4], 0  ;;  %s346_s0 = inlined_call_operand.hbm [shape: bf16[16,128], index: 0, kind: input, shape index: {}]   ;;  %s347_s1 = inlined_call_operand.hbm [shape: bf16[128,128], index: 1, kind: input, shape index: {}]   ;;  %s348_s2 = inlined_call_operand.hbm [shape: f32[16,128], index: 2, kind: output, shape index: {}]  }
   0x1   :  { %8 = vsyncpa [#allocation7], 0 }
   0x2   :  { %9 = vsyncpa [#allocation5], 0  ;;  %s313_s9 = smov [#allocation3]  }
   0x3   :  { %s15_s10 = sshll.u32 %s313_s9, 4  ;;  %s16_s10 = int_to_ptr.vmem [resolvable:$true] %s15_s10 }
   0x4   :  { %s255_s11 = scalar_lea.vmem %s16_s10, 128  ;;  %p260_p1 = scmp.lt.s32.totalorder %s16_s10, %s16_s10 }
   0x5   :  { %p256_p0 = scmp.ne.s32.totalorder %s16_s10, %s255_s11  ;;  %p261_p2 = scmp.lt.s32.totalorder %s255_s11, %s255_s11 }
   0x7   :  { %p262_p3 = por %p261_p2, %p260_p1 }
   0x9   :  { %p263_p4 = pnand %p262_p3, %p256_p0 }
   0xb   :  { %266 = shalt.err (!%p263_p4)
}
   0xc   :  { %s314_s12 = smov 64   ;;  %s315_s13 = smov 4  }
   0xd   :  { %21 = dma.hbm_to_vmem [thread:$0]  %s346_s0, 128, %s16_s10, [#allocation4], %s314_s12, %s314_s12, %s315_s13  }
   0xe   :  { %s316_s16 = smov [#allocation6]  }
   0xf   :  { %s27_s17 = sshll.u32 %s316_s16, 4  ;;  %s28_s17 = int_to_ptr.vmem [resolvable:$true] %s27_s17 }
  0x10   :  { %s275_s18 = scalar_lea.vmem %s28_s17, 1024  ;;  %p280_p6 = scmp.lt.s32.totalorder %s28_s17, %s28_s17 }
  0x11   :  { %p276_p5 = scmp.ne.s32.totalorder %s28_s17, %s275_s18  ;;  %p281_p7 = scmp.lt.s32.totalorder %s275_s18, %s275_s18 }
  0x13   :  { %p282_p8 = por %p281_p7, %p280_p6 }
  0x15   :  { %p283_p9 = pnand %p282_p8, %p276_p5 }
  0x17   :  { %286 = shalt.err (!%p283_p9)
}
  0x18   :  { %33 = dma.hbm_to_vmem [thread:$0]  %s347_s1, 1024, %s28_s17, [#allocation7], %s314_s12, %s314_s12, %s315_s13  }
  0x19   :  { %307 = dma.done.wait [#allocation4], 128  }
  0x1a   :  { %308 = vsyncadd [#allocation4], 4294967168 }
  0x1b   :  { %309 = dma.done.wait [#allocation7], 1024  }
  0x1c   :  { %310 = vsyncadd [#allocation7], 4294966272  ;;  %v317_v0 = vmov 0.0   ;;  %vm318_vm0 = vmmov 0   ;;  %v238_v1 = vld [vmem:[#allocation6 + $0x38] sm:$0xff]   ;;  %v239_v2 = vld [vmem:[#allocation6 + $0x30] sm:$0xff]  }
  0x1d   :  { %209 = vmatprep.subr.bf16.mxu0 %v317_v0  ;;  %225 = vmatprep.mubr.msk.bf16.mxu0 %vm318_vm0, %v317_v0  ;;  %v240_v3 = vld [vmem:[#allocation6 + $0x28] sm:$0xff]   ;;  %v241_v4 = vld [vmem:[#allocation6 + $0x20] sm:$0xff]   ;;  %v242_v5 = vld [vmem:[#allocation6 + $0x18] sm:$0xff]   ;;  %s319_s0 = smov [#allocation8]  }
  0x1e   :  { %210 = vmatpush3.bf16.msra.mxu0 %v238_v1  ;;  %v243_v6 = vld [vmem:[#allocation6 + $0x10] sm:$0xff]   ;;  %v244_v7 = vld [vmem:[#allocation6 + $0x8] sm:$0xff]   ;;  %v245_v8 = vld [vmem:[#allocation6] sm:$0xff]   ;;  %s178_s1 = sshll.u32 %s319_s0, 4  ;;  %s179_s1 = int_to_ptr.vmem [resolvable:$true] %s178_s1 }
  0x1f   :  { %211 = vmatprep.subr.bf16.mxu0 %v317_v0  ;;  %v246_v9 = vld [vmem:[#allocation3] sm:$0xff]   ;;  %s287_s21 = scalar_lea.vmem %s179_s1, 256  ;;  %p292_p11 = scmp.lt.s32.totalorder %s179_s1, %s179_s1 }
  0x20   :  { %p288_p10 = scmp.ne.s32.totalorder %s179_s1, %s287_s21  ;;  %p293_p12 = scmp.lt.s32.totalorder %s287_s21, %s287_s21 }
  0x22   :  { %212 = vmatpush3.bf16.msra.mxu0 %v239_v2  ;;  %p294_p13 = por %p293_p12, %p292_p11 }
  0x23   :  { %213 = vmatprep.subr.bf16.mxu0 %v317_v0 }
  0x24   :  { %p295_p0 = pnand %p294_p13, %p288_p10 }
  0x26   :  { %214 = vmatpush3.bf16.msra.mxu0 %v240_v3 }
  0x27   :  { %215 = vmatprep.subr.bf16.mxu0 %v317_v0 }
  0x2a   :  { %216 = vmatpush3.bf16.msra.mxu0 %v241_v4 }
  0x2b   :  { %217 = vmatprep.subr.bf16.mxu0 %v317_v0 }
  0x2e   :  { %218 = vmatpush3.bf16.msra.mxu0 %v242_v5 }
  0x2f   :  { %219 = vmatprep.subr.bf16.mxu0 %v317_v0 }
  0x32   :  { %220 = vmatpush3.bf16.msra.mxu0 %v243_v6 }
  0x33   :  { %221 = vmatprep.subr.bf16.mxu0 %v317_v0 }
  0x36   :  { %222 = vmatpush3.bf16.msra.mxu0 %v244_v7 }
  0x37   :  { %223 = vmatprep.subr.bf16.mxu0 %v317_v0 }
  0x3a   :  { %224 = vmatpush3.bf16.msra.mxu0 %v245_v8 }
  0x3d   :  { %226 = vmatmul.mubr.bf16.vlgmr.msra.gmra.mxu0 %v246_v9 }
  0xfd   :  { %v155_v10 = vpop.f32.mrf.mxu0 }
  0xfe   :  { %171 = vst [vmem:[#allocation8] sm:$0xff] %v155_v10 }
  0xff   :  { %v227_v11 = vpop.f32.mrf.mxu0 }
 0x101   :  { %v158_v12 = vpop.f32.mrf.mxu0 }
 0x102   :  { %172 = vst [vmem:[#allocation8 + $0x8] sm:$0xff] %v158_v12 }
 0x103   :  { %v228_v13 = vpop.f32.mrf.mxu0 }
 0x104   :  { %298 = shalt.err (!%p295_p0)
}
 0x105   :  { %s320_s22 = smov 128   ;;  %s321_s23 = smov 8  }
 0x106   :  { %184 = dma.vmem_to_hbm [thread:$0]  %s179_s1, 256, %s348_s2, [#allocation5], %s320_s22, %s320_s22, %s321_s23  }
 0x107   :  { %311 = dma.done.wait [#allocation5], 256  }
 0x108   :  { %312 = vsyncadd [#allocation5], 4294967040 }
 0x109   :  { %188 = vsyncpa [#allocation4], 1 }
 0x10a   :  { %189 = vsyncpa [#allocation7], 1 }
 0x10b   :  { %190 = vsyncpa [#allocation5], 1 }

</bundles_post_ra>
